<compile_context>
chip_gen: v5e
topology: v5e:2x2
jax: 0.10.0
libtpu: 0.0.40
codegen_flags: <defaults>
</compile_context>

<pallas_src>
import functools

import jax
import jax.numpy as jnp
from jax.experimental import pallas as pl
from jax.experimental.pallas import tpu as pltpu


_ROW_TILE_MAX = 64         # rows (sublane axis) per block; multiple of 8/16/32
_LANE_TILE_MAX = 16384     # spatial elements (lane axis) per block (~4 MiB f32)
_LANE_PARTIAL = 128        # per-lane partial-sum width (one vreg of lanes)
_VMEM_LIMIT = 48 * 1024 * 1024


def _stats_kernel(x_ref, s1_ref, s2_ref, *, s_per_slab, s_extent, ts, lw,
                  need_mask):
    """Accumulate per-row sum / sum-of-squares partials over the S-tile axis.

    x_ref : (R, TS)  input tile (any float dtype; accumulated in f32)
    s*_ref: (R, lw)  f32 per-lane partial sums, resident across grid axis 2
    """
    @pl.when(pl.program_id(2) == 0)
    def _init():
        s1_ref[...] = jnp.zeros_like(s1_ref)
        s2_ref[...] = jnp.zeros_like(s2_ref)

    if lw == 1:
        # Single S-tile whose width is not a multiple of 128 (small S): one
        # in-kernel cross-lane reduction, runs once per row block.
        x = x_ref[...].astype(jnp.float32)
        s1_ref[...] += jnp.sum(x, axis=-1, keepdims=True)
        s2_ref[...] += jnp.sum(x * x, axis=-1, keepdims=True)
    else:
        # Lane-chunked VPU accumulation; cross-lane reduce deferred to JAX glue.
        # Global column offset of this tile (slab id * tiles-per-slab + tile id).
        col0 = (pl.program_id(1) * s_per_slab + pl.program_id(2)) * ts
        p1 = jnp.zeros(s1_ref.shape, jnp.float32)
        p2 = jnp.zeros(s2_ref.shape, jnp.float32)
        for k in range(ts // lw):
            c = x_ref[:, k * lw:(k + 1) * lw].astype(jnp.float32)
            if need_mask:
                # Ragged last tile: zero the out-of-range lanes so garbage from
                # the partially-filled VMEM block never contaminates the sums.
                cols = col0 + k * lw + jax.lax.broadcasted_iota(
                    jnp.int32, c.shape, 1)
                c = jnp.where(cols < s_extent, c, 0.0)
            p1 = p1 + c
            p2 = p2 + c * c
        s1_ref[...] += p1
        s2_ref[...] += p2


def _norm_kernel(x_ref, a_ref, b_ref, o_ref):
    # x_ref: (R, TS); a_ref/b_ref: (R, 1) f32 -> broadcast over lanes; f32 math,
    # cast only on the final store.  Out-of-bounds rows/lanes of a ragged last
    # tile are discarded by the pipeline on writeback.
    x = x_ref[...].astype(jnp.float32)
    o_ref[...] = (x * a_ref[...] + b_ref[...]).astype(o_ref.dtype)


def switch_norm_3d(x, weight, bias, mean_weight, var_weight, eps=1e-5):
    N, C, D, H, W = x.shape
    S = D * H * W
    NR = N * C

    x2 = x.reshape(NR, S)

    # Tile choice: full extent when it fits, else the (8,128)-aligned maximum.
    # Ragged last tiles are allowed (cdiv grid) and handled in-kernel.
    R = NR if NR <= _ROW_TILE_MAX else _ROW_TILE_MAX
    TS = S if S <= _LANE_TILE_MAX else _LANE_TILE_MAX
    n_row_blocks = pl.cdiv(NR, R)
    n_s_blocks = pl.cdiv(S, TS)
    lw = _LANE_PARTIAL if TS % _LANE_PARTIAL == 0 else 1
    need_mask = (S % TS) != 0

    # v7x megacore: with a single row block the only parallel axis would be
    # size 1, idling one TensorCore.  Split the S-tile axis into two
    # independent partial-sum slabs ("parallel"); the extra reduction folds
    # into the glue jnp.sum below.  No effect on single-TC chips.
    P = 2 if (n_row_blocks == 1 and n_s_blocks >= 2 and n_s_blocks % 2 == 0) \
        else 1
    n_s_per_slab = n_s_blocks // P

    stats = functools.partial(
        _stats_kernel, s_per_slab=n_s_per_slab, s_extent=S, ts=TS, lw=lw,
        need_mask=need_mask)

    # ---- Pass 1: per-row sum / sum-of-squares partials over S (Pallas) ----
    s1p, s2p = pl.pallas_call(
        stats,
        out_shape=(jax.ShapeDtypeStruct((NR, P * lw), jnp.float32),
                   jax.ShapeDtypeStruct((NR, P * lw), jnp.float32)),
        grid=(n_row_blocks, P, n_s_per_slab),
        in_specs=[pl.BlockSpec((R, TS),
                               lambda r, p, s: (r, p * n_s_per_slab + s))],
        out_specs=(pl.BlockSpec((R, lw), lambda r, p, s: (r, p)),
                   pl.BlockSpec((R, lw), lambda r, p, s: (r, p))),
        compiler_params=pltpu.CompilerParams(
            dimension_semantics=("parallel", "parallel", "arbitrary"),
            vmem_limit_bytes=_VMEM_LIMIT),
    )(x2)

    # ---- Glue: tiny (N, C)-sized statistic mixing in plain JAX ----
    s1 = jnp.sum(s1p, axis=-1).reshape(N, C)
    s2 = jnp.sum(s2p, axis=-1).reshape(N, C)

    mean_in = s1 / S
    # torch.Tensor.var defaults to unbiased (divide by S - 1).
    # TODO(synk): single-pass sum-of-squares variance can lose precision for
    # very large S with large means (catastrophic cancellation); a shifted /
    # two-pass variance would be more robust.
    var_in = (s2 - S * mean_in ** 2) / max(S - 1, 1)
    var_in = jnp.maximum(var_in, 0.0)          # fp-rounding insurance
    temp = var_in + mean_in ** 2

    mean_ln = jnp.mean(mean_in, axis=1, keepdims=True)                    # (N, 1)
    var_ln = jnp.maximum(jnp.mean(temp, axis=1, keepdims=True)
                         - mean_ln ** 2, 0.0)
    # training-mode batch-norm statistics
    mean_bn = jnp.mean(mean_in, axis=0, keepdims=True)                    # (1, C)
    var_bn = jnp.maximum(jnp.mean(temp, axis=0, keepdims=True)
                         - mean_bn ** 2, 0.0)

    mw = jax.nn.softmax(mean_weight.astype(jnp.float32))
    vw = jax.nn.softmax(var_weight.astype(jnp.float32))

    mean = mw[0] * mean_in + mw[1] * mean_ln + mw[2] * mean_bn            # (N, C)
    var = vw[0] * var_in + vw[1] * var_ln + vw[2] * var_bn                # (N, C)

    rstd = jax.lax.rsqrt(var + eps)
    gamma = weight.reshape(1, C).astype(jnp.float32)
    beta = bias.reshape(1, C).astype(jnp.float32)

    # out = (x - mean) * rstd * gamma + beta  ==  x * a + b   (a, b kept in f32)
    a = (rstd * gamma).reshape(NR, 1)
    b = (beta - mean * rstd * gamma).reshape(NR, 1)

    # ---- Pass 2: fused elementwise normalization (Pallas) ----
    out = pl.pallas_call(
        _norm_kernel,
        out_shape=jax.ShapeDtypeStruct((NR, S), x.dtype),
        grid=(n_row_blocks, n_s_blocks),
        in_specs=[
            pl.BlockSpec((R, TS), lambda r, s: (r, s)),
            pl.BlockSpec((R, 1), lambda r, s: (r, 0)),  # fetched once per row block
            pl.BlockSpec((R, 1), lambda r, s: (r, 0)),
        ],
        out_specs=pl.BlockSpec((R, TS), lambda r, s: (r, s)),
        compiler_params=pltpu.CompilerParams(
            dimension_semantics=("parallel", "parallel"),
            vmem_limit_bytes=_VMEM_LIMIT),
    )(x2, a, b)

    return out.reshape(N, C, D, H, W)


def _reference(x, weight, bias, mean_weight, var_weight, eps=1e-5):
    # Pure-JAX transcription of the PyTorch forward (training mode).
    N, C, D, H, W = x.shape
    x3 = x.reshape(N, C, -1)
    mean_in = jnp.mean(x3, axis=-1, keepdims=True)
    var_in = jnp.var(x3, axis=-1, keepdims=True, ddof=1)
    mean_ln = jnp.mean(mean_in, axis=1, keepdims=True)
    temp = var_in + mean_in ** 2
    var_ln = jnp.mean(temp, axis=1, keepdims=True) - mean_ln ** 2
    mean_bn = jnp.mean(mean_in, axis=0, keepdims=True)
    var_bn = jnp.mean(temp, axis=0, keepdims=True) - mean_bn ** 2
    mw = jax.nn.softmax(mean_weight)
    vw = jax.nn.softmax(var_weight)
    mean = mw[0] * mean_in + mw[1] * mean_ln + mw[2] * mean_bn
    var = vw[0] * var_in + vw[1] * var_ln + vw[2] * var_bn
    xn = (x3 - mean) / jnp.sqrt(var + eps)
    return xn.reshape(N, C, D, H, W) * weight + bias


if __name__ == "__main__":
    key = jax.random.PRNGKey(0)
    N, C, D, H, W = 2, 4, 4, 8, 8

    x = jax.random.normal(key, (N, C, D, H, W), dtype=jnp.float32)

    # Deterministic parameter init (matches SwitchNorm3d.reset_parameters,
    # last_gamma=False, using_bn=True).
    weight = jnp.ones((1, C, 1, 1, 1), jnp.float32)
    bias = jnp.zeros((1, C, 1, 1, 1), jnp.float32)
    mean_weight = jnp.ones((3,), jnp.float32)
    var_weight = jnp.ones((3,), jnp.float32)

    out = switch_norm_3d(x, weight, bias, mean_weight, var_weight)
    out = jax.block_until_ready(out)

    ref = _reference(x, weight, bias, mean_weight, var_weight)
    assert out.shape == (N, C, D, H, W)
    assert jnp.allclose(out, ref, atol=1e-5, rtol=1e-5)

    print("KERNEL_OK")
</pallas_src>

<mosaic_0001>
module attributes {stable_mosaic.version = 11 : i64} {
  func.func @_stats_kernel(%arg0: i32, %arg1: i32, %arg2: i32, %arg3: memref<8x256xf32, #tpu.memory_space<vmem>>, %arg4: memref<8x128xf32, #tpu.memory_space<vmem>>, %arg5: memref<8x128xf32, #tpu.memory_space<vmem>>) attributes {dimension_semantics = [#tpu.dimension_semantics<parallel>, #tpu.dimension_semantics<parallel>, #tpu.dimension_semantics<arbitrary>], iteration_bounds = array<i64: 1, 1, 1>, scalar_prefetch = 0 : i64, scratch_operands = 0 : i64, tpu.core_type = #tpu.core_type<tc>, window_params = [{transform_indices = @transform_0, window_bounds = array<i64: 8, 256>}, {transform_indices = @transform_1, window_bounds = array<i64: 8, 128>}, {transform_indices = @transform_2, window_bounds = array<i64: 8, 128>}]} {
    %c0_i32 = arith.constant 0 : i32
    %0 = arith.cmpi eq, %arg2, %c0_i32 : i32
    %1 = arith.extui %0 : i1 to i32
    %c0_i32_0 = arith.constant 0 : i32
    %2 = arith.cmpi ne, %1, %c0_i32_0 : i32
    scf.if %2 {
      %cst_12 = arith.constant 0.000000e+00 : f32
      %19 = vector.broadcast %cst_12 : f32 to vector<8x128xf32>
      %c0_13 = arith.constant 0 : index
      %c0_14 = arith.constant 0 : index
      %20 = vector.load %arg4[%c0_13, %c0_14] : memref<8x128xf32, #tpu.memory_space<vmem>>, vector<8x128xf32>
      tpu.vector_store %arg4[%c0_13, %c0_14], %19 {strides = array<i32>} : memref<8x128xf32, #tpu.memory_space<vmem>>, vector<8x128xf32>,
      %cst_15 = arith.constant 0.000000e+00 : f32
      %21 = vector.broadcast %cst_15 : f32 to vector<8x128xf32>
      %c0_16 = arith.constant 0 : index
      %c0_17 = arith.constant 0 : index
      %22 = vector.load %arg5[%c0_16, %c0_17] : memref<8x128xf32, #tpu.memory_space<vmem>>, vector<8x128xf32>
      tpu.vector_store %arg5[%c0_16, %c0_17], %21 {strides = array<i32>} : memref<8x128xf32, #tpu.memory_space<vmem>>, vector<8x128xf32>,
    } else {
    }
    %cst = arith.constant 0.000000e+00 : f32
    %3 = vector.broadcast %cst : f32 to vector<8x128xf32>
    %cst_1 = arith.constant 0.000000e+00 : f32
    %4 = vector.broadcast %cst_1 : f32 to vector<8x128xf32>
    %c0 = arith.constant 0 : index
    %c0_2 = arith.constant 0 : index
    %5 = vector.load %arg3[%c0, %c0_2] : memref<8x256xf32, #tpu.memory_space<vmem>>, vector<8x128xf32>
    %6 = arith.addf %3, %5 : vector<8x128xf32>
    %7 = arith.mulf %5, %5 : vector<8x128xf32>
    %8 = arith.addf %4, %7 : vector<8x128xf32>
    %c0_3 = arith.constant 0 : index
    %c128 = arith.constant 128 : index
    %9 = vector.load %arg3[%c0_3, %c128] : memref<8x256xf32, #tpu.memory_space<vmem>>, vector<8x128xf32>
    %10 = arith.addf %6, %9 : vector<8x128xf32>
    %11 = arith.mulf %9, %9 : vector<8x128xf32>
    %12 = arith.addf %8, %11 : vector<8x128xf32>
    %c0_4 = arith.constant 0 : index
    %c0_5 = arith.constant 0 : index
    %13 = vector.load %arg4[%c0_4, %c0_5] : memref<8x128xf32, #tpu.memory_space<vmem>>, vector<8x128xf32>
    %14 = arith.addf %13, %10 : vector<8x128xf32>
    %c0_6 = arith.constant 0 : index
    %c0_7 = arith.constant 0 : index
    %15 = vector.load %arg4[%c0_6, %c0_7] : memref<8x128xf32, #tpu.memory_space<vmem>>, vector<8x128xf32>
    tpu.vector_store %arg4[%c0_6, %c0_7], %14 {strides = array<i32>} : memref<8x128xf32, #tpu.memory_space<vmem>>, vector<8x128xf32>,
    %c0_8 = arith.constant 0 : index
    %c0_9 = arith.constant 0 : index
    %16 = vector.load %arg5[%c0_8, %c0_9] : memref<8x128xf32, #tpu.memory_space<vmem>>, vector<8x128xf32>
    %17 = arith.addf %16, %12 : vector<8x128xf32>
    %c0_10 = arith.constant 0 : index
    %c0_11 = arith.constant 0 : index
    %18 = vector.load %arg5[%c0_10, %c0_11] : memref<8x128xf32, #tpu.memory_space<vmem>>, vector<8x128xf32>
    tpu.vector_store %arg5[%c0_10, %c0_11], %17 {strides = array<i32>} : memref<8x128xf32, #tpu.memory_space<vmem>>, vector<8x128xf32>,
    return
  }
  func.func @transform_0(%arg0: i32, %arg1: i32, %arg2: i32) -> (i32, i32) {
    %c1_i32 = arith.constant 1 : i32
    %0 = arith.muli %arg1, %c1_i32 : i32
    %1 = arith.addi %0, %arg2 : i32
    %c0_i32 = arith.constant 0 : i32
    return %arg0, %1 : i32, i32
  }
  func.func @transform_1(%arg0: i32, %arg1: i32, %arg2: i32) -> (i32, i32) {
    %c0_i32 = arith.constant 0 : i32
    return %arg0, %arg1 : i32, i32
  }
  func.func @transform_2(%arg0: i32, %arg1: i32, %arg2: i32) -> (i32, i32) {
    %c0_i32 = arith.constant 0 : i32
    return %arg0, %arg1 : i32, i32
  }
}

</mosaic_0001>

<bundles_post_ra>
// kernel: tpu_custom_call.1
= control target key start
LH: loop header
LB: loop body
LE: loop exit
PB: predicated region body
PF: predicated region fallthrough
CT: control target
= control target key end

     0   :  { %8 = vsyncpa [#allocation3], 0  ;;  %s194_s0 = inlined_call_operand.hbm [shape: f32[8,256], index: 0, kind: input, shape index: {}]   ;;  %s195_s1 = inlined_call_operand.hbm [shape: f32[8,128], index: 1, kind: output, shape index: {0}]   ;;  %s196_s2 = inlined_call_operand.hbm [shape: f32[8,128], index: 2, kind: output, shape index: {1}]  }
   0x1   :  { %9 = vsyncpa [#allocation4], 0 }
   0x2   :  { %10 = vsyncpa [#allocation7], 0  ;;  %s20_s11 = sshll.u32 %s194_s0, 4  ;;  %s167_s12 = smov [#allocation2]   ;;  %s21_s11 = int_to_ptr.hbm [resolvable:$true] %s20_s11 }
   0x3   :  { %s22_s13 = sshll.u32 %s167_s12, 4  ;;  %s23_s13 = int_to_ptr.vmem [resolvable:$true] %s22_s13 }
   0x4   :  { %25 = dma.hbm_to_vmem [thread:$0]  %s21_s11, 256, %s23_s13, [#allocation3]  }
   0x5   :  { %161 = dma.done.wait [#allocation3], 256  }
   0x6   :  { %162 = vsyncadd [#allocation3], 4294967040  ;;  %v38_v0 = vld [vmem:[#allocation2] sm:$0xff]  ;;  %v42_v1 = vld [vmem:[#allocation2 + $0x8] sm:$0xff]  ;;  %s168_s14 = smov [#allocation5]   ;;  %s59_s18 = sshll.u32 %s195_s1, 4  ;;  %s60_s18 = int_to_ptr.hbm [resolvable:$true] %s59_s18 }
   0x7   :  { %s57_s15 = sshll.u32 %s168_s14, 4  ;;  %v43_v2 = vadd.f32 %v42_v1, %v38_v0  ;;  %v40_v3 = vmul.f32 %v38_v0, %v38_v0  ;;  %v44_v4 = vmul.f32 %v42_v1, %v42_v1  ;;  %s169_s19 = smov [#allocation6]   ;;  %s58_s15 = int_to_ptr.vmem [resolvable:$true] %s57_s15 }
   0x8   :  { %s68_s0 = sshll.u32 %s169_s19, 4  ;;  %s70_s22 = sshll.u32 %s196_s2, 4  ;;  %s69_s0 = int_to_ptr.vmem [resolvable:$true] %s68_s0  ;;  %s71_s22 = int_to_ptr.hbm [resolvable:$true] %s70_s22 }
   0x9   :  { %v45_v5 = vadd.f32 %v44_v4, %v40_v3  ;;  %48 = vst [vmem:[#allocation5] sm:$0xff] %v43_v2 }
   0xa   :  { %62 = dma.vmem_to_hbm [thread:$0]  %s58_s15, 128, %s60_s18, [#allocation4]  }
   0xb   :  { %51 = vst [vmem:[#allocation6] sm:$0xff] %v45_v5 }
   0xc   :  { %73 = dma.vmem_to_hbm [thread:$0]  %s69_s0, 128, %s71_s22, [#allocation7]  }
   0xd   :  { %163 = dma.done.wait [#allocation4], 128  }
   0xe   :  { %164 = vsyncadd [#allocation4], 4294967168 }
   0xf   :  { %165 = dma.done.wait [#allocation7], 128  }
  0x10   :  { %166 = vsyncadd [#allocation7], 4294967168 }
  0x11   :  { %82 = vsyncpa [#allocation3], 1 }
  0x12   :  { %83 = vsyncpa [#allocation4], 1 }
  0x13   :  { %84 = vsyncpa [#allocation7], 1 }

</bundles_post_ra>
